<compile_context>
chip_gen: v7x
topology: tpu7x:2x2x1
jax: 0.10.0
libtpu: 0.0.40
codegen_flags: <defaults>
</compile_context>

<pallas_src>
import functools

import jax
import jax.numpy as jnp
from jax.experimental import pallas as pl
from jax.experimental.pallas import tpu as pltpu


def neuro_fuzzy_kernel(rhs_ref, lhs_ref, eT_ref, o_ref, *,
                       num_clusters, latent_dim, output_length, training):
    K = num_clusters
    C = latent_dim
    O = output_length
    KC = K * C
    KO = K * O

    # ---- single fused block-diagonal MXU matmul (bf16 x bf16 -> f32) -------
    #   rows 0..KC-1 : diff[k*C+c', n] = ((mu_k - z_n) @ sigma_inv_k)[c']
    #   rows KC..    : lyT[m, n]       = (y_n @ W^T + b)[m]
    res = jnp.dot(lhs_ref[...], rhs_ref[...],
                  preferred_element_type=jnp.float32)            # (KC+KO, TN)

    diff = res[0:KC, :]                                          # (KC, TN)
    # block-indicator reduction: d2[k, n] = sum_{c'} diff[k*C+c', n]^2
    # (kept on the MXU; v5e could move this to a sublane-group reduce if the
    #  128x128 MXU ever becomes the bottleneck there).
    dsq = (diff * diff).astype(jnp.bfloat16)
    d2 = jnp.dot(eT_ref[...], dsq, preferred_element_type=jnp.float32)  # (K, TN)
    d2 = jnp.maximum(d2, 1e-12)                                  # torch.clamp(min=1e-12)

    # ---- softmax over clusters (sublane axis), numerically stable ----------
    logits = -d2
    m = jnp.max(logits, axis=0, keepdims=True)
    e = jnp.exp(logits - m)                                      # (K, TN)

    if training:
        # one_hot(argmax(psi)) over clusters; argmax(psi) == argmax(e) since
        # the softmax normaliser is a positive per-column scalar.
        idx = jax.lax.broadcasted_iota(jnp.int32, e.shape, 0).astype(jnp.float32)
        maxv = jnp.max(e, axis=0, keepdims=True)
        cand = jnp.where(e == maxv, idx, jnp.float32(K))
        winner = jnp.min(cand, axis=0, keepdims=True)            # first index wins ties
        mask = (idx == winner).astype(jnp.float32)               # (K, TN)
    else:
        denom = jnp.sum(e, axis=0, keepdims=True)
        mask = e * pl.reciprocal(denom, approx=True)             # EUP, not VPU divide

    # ---- consequent mixing: 8-sublane-aligned slices + sublane broadcasts --
    lyT = res[KC:KC + KO, :]                                     # (KO, TN)
    out = mask[0:1, :] * lyT[0:O, :]
    for k in range(1, K):
        out = out + mask[k:k + 1, :] * lyT[k * O:(k + 1) * O, :]
    o_ref[...] = out.astype(o_ref.dtype)                         # (O, TN) lane-dense store


def _pick_row_tile(n_rows, target):
    """Multiple of 128; capped so the row grid has >= 2 balanced tiles when possible."""
    half = -(-n_rows // 2)                       # cdiv(N, 2)
    half_up = ((half + 127) // 128) * 128
    return max(128, min(target, half_up))


def neuro_fuzzy_forward(y, z, params, *, training=False, row_tile=2048):
    mu = params["mu"]                 # (K, C)
    sigma_inv = params["sigma_inv"]   # (K, C, C)
    w_lin = params["w_lin"]           # (K*O, C)   torch nn.Linear weight layout
    b_lin = params["b_lin"]           # (K*O,)

    B, L, C = z.shape
    K = mu.shape[0]
    KO = w_lin.shape[0]
    O = KO // K
    KC = K * C
    N = B * L
    F = 2 * C + 8                     # fused (z | y | const) axis, padded to 8-sublane multiple

    assert row_tile % 128 == 0, "row_tile must be a multiple of 128 (lane width)"
    tn = _pick_row_tile(N, row_tile)
    n_tiles = pl.cdiv(N, tn)
    n_pad = n_tiles * tn

    f32, bf16 = jnp.float32, jnp.bfloat16

    # ---- tiny glue (plain JAX): resident fused LHS ---------------------------
    # ablkT[k*C + c', c] = sigma_inv[k, c, c']
    # mproj[k*C + c']    = (mu_k @ sigma_inv_k)[c']
    ablkT = jnp.transpose(sigma_inv.astype(f32), (0, 2, 1)).reshape(KC, C)
    mproj = jnp.einsum("kc,kcd->kd", mu.astype(f32), sigma_inv.astype(f32)).reshape(KC)
    lhs = jnp.zeros((KC + KO, F), f32)
    lhs = lhs.at[:KC, :C].set(-ablkT)                  # -sigma_inv_k^T acting on z^T
    lhs = lhs.at[:KC, 2 * C].set(mproj)                # + mu_k @ sigma_inv_k (via ones row)
    lhs = lhs.at[KC:, C:2 * C].set(w_lin.astype(f32))  # linear weight acting on y^T
    lhs = lhs.at[KC:, 2 * C].set(b_lin.astype(f32))    # + bias (via ones row)
    lhs = lhs.astype(bf16)

    # block-indicator reducer: eT[k, j] = 1 iff j // C == k
    eT = (jnp.arange(KC)[None, :] // C == jnp.arange(K)[:, None]).astype(bf16)

    # ---- single streamed bf16 input [z^T; y^T; ones; 0] (feature-major) ------
    # (half the HBM bytes of the previous f32 z^T / y^T pair)
    zT = jnp.moveaxis(z, -1, 0).reshape(C, N)
    yT = jnp.moveaxis(y, -1, 0).reshape(C, N)
    ones = jnp.ones((1, N), z.dtype)
    zeros = jnp.zeros((F - 2 * C - 1, N), z.dtype)
    rhs = jnp.concatenate([zT, yT, ones, zeros], axis=0).astype(bf16)   # (F, N)
    if n_pad != N:
        rhs = jnp.pad(rhs, ((0, 0), (0, n_pad - N)))
    # TODO(synk): have the upstream producer emit feature-major bf16 activations
    # to remove this one remaining layout copy outside the pipeline.

    kernel = functools.partial(
        neuro_fuzzy_kernel, num_clusters=K, latent_dim=C,
        output_length=O, training=training,
    )

    flops = (2 * (KC + KO) * F + 2 * K * KC + 16 * K) * n_pad
    bytes_accessed = rhs.size * 2 + lhs.size * 2 + eT.size * 2 + O * n_pad * 4

    outT = pl.pallas_call(
        kernel,
        out_shape=jax.ShapeDtypeStruct((O, n_pad), jnp.float32),
        grid_spec=pltpu.PrefetchScalarGridSpec(
            num_scalar_prefetch=0,
            grid=(n_tiles,),
            in_specs=[
                pl.BlockSpec((F, tn), lambda i: (0, i)),         # fused [z;y;1]^T (streamed, bf16)
                pl.BlockSpec((KC + KO, F), lambda i: (0, 0)),    # fused projection+linear (resident)
                pl.BlockSpec((K, KC), lambda i: (0, 0)),         # block indicator (resident)
            ],
            out_specs=pl.BlockSpec((O, tn), lambda i: (0, i)),   # lane-dense output slab
        ),
        compiler_params=pltpu.CompilerParams(
            dimension_semantics=("parallel",),                   # v7x: shard rows across both TCs
        ),
        cost_estimate=pl.CostEstimate(
            flops=flops,
            transcendentals=(K + 1) * n_pad,
            bytes_accessed=bytes_accessed,
        ),
    )(rhs, lhs, eT)

    out = outT[:, :N].T                                          # (N, O)
    return out.reshape(B, L, 1, O)


def neuro_fuzzy_reference(y, z, params, *, training=False):
    """Pure-JAX mirror of the torch forward (for a sanity check)."""
    mu, sigma_inv = params["mu"], params["sigma_inv"]
    w_lin, b_lin = params["w_lin"], params["b_lin"]
    B, L, C = z.shape
    K = mu.shape[0]
    O = w_lin.shape[0] // K
    d = mu[None, None, :, :] - z[:, :, None, :]                  # (B,L,K,C)
    S = jnp.einsum("kab,kcb->kac", sigma_inv, sigma_inv)         # (K,C,C)
    t = jnp.einsum("blkc,kcd->blkd", d, S)
    d2 = jnp.maximum(jnp.sum(t * d, axis=-1), 1e-12)             # (B,L,K)
    psi = jax.nn.softmax(-d2, axis=-1)
    if training:
        mask = jax.nn.one_hot(jnp.argmax(psi, axis=-1), K, dtype=psi.dtype)
    else:
        mask = psi
    ly = (y @ w_lin.T + b_lin).reshape(B, L, K, O)
    out = jnp.einsum("blk,blko->blo", mask, ly)
    return out[:, :, None, :]


def init_params(key, num_clusters, latent_dim, output_length):
    k1, k2, k3 = jax.random.split(key, 3)
    # mu = 0.1 * 2 * (rand - 0.5)  -> uniform in (-0.1, 0.1)
    mu = 0.1 * 2.0 * (
        jax.random.uniform(k1, (num_clusters, latent_dim), dtype=jnp.float32) - 0.5
    )
    # sigma_inv: zeros with diagonal filled with 100
    sigma_inv = jnp.broadcast_to(
        100.0 * jnp.eye(latent_dim, dtype=jnp.float32),
        (num_clusters, latent_dim, latent_dim),
    )
    # torch.nn.Linear default init: U(-1/sqrt(fan_in), 1/sqrt(fan_in))
    bound = 1.0 / jnp.sqrt(jnp.float32(latent_dim))
    ko = num_clusters * output_length
    w_lin = jax.random.uniform(
        k2, (ko, latent_dim), minval=-bound, maxval=bound, dtype=jnp.float32
    )
    b_lin = jax.random.uniform(
        k3, (ko,), minval=-bound, maxval=bound, dtype=jnp.float32
    )
    return {"mu": mu, "sigma_inv": sigma_inv, "w_lin": w_lin, "b_lin": b_lin}


if __name__ == "__main__":
    # Shapes consistent with the module's forward:
    #   input_length L = 8, latent_dim C = 32, num_clusters K = 4,
    #   output_length O = 8, batch B = 2.
    B, L, C, K, O = 2, 8, 32, 4, 8

    key = jax.random.PRNGKey(0)
    kp, ky, ka, kn = jax.random.split(key, 4)
    params = init_params(kp, K, C, O)

    y = jax.random.normal(ky, (B, L, C), dtype=jnp.float32)
    # z near the cluster centres (what the fuzzy layer sees after clustering);
    # keeps the demo well-conditioned under bf16 MXU streaming.
    assign = jax.random.randint(ka, (B, L), 0, K)
    z = params["mu"][assign] + 0.01 * jax.random.normal(kn, (B, L, C), dtype=jnp.float32)

    out_eval = neuro_fuzzy_forward(y, z, params, training=False)
    out_train = neuro_fuzzy_forward(y, z, params, training=True)
    jax.block_until_ready((out_eval, out_train))

    ref_eval = neuro_fuzzy_reference(y, z, params, training=False)
    ref_train = neuro_fuzzy_reference(y, z, params, training=True)

    assert out_eval.shape == (B, L, 1, O)
    assert out_train.shape == (B, L, 1, O)
    assert bool(jnp.allclose(out_eval, ref_eval, rtol=5e-2, atol=5e-2))
    assert bool(jnp.allclose(out_train, ref_train, rtol=5e-2, atol=5e-2))
    print("KERNEL_OK")
</pallas_src>

<mosaic_0001>
module attributes {stable_mosaic.version = 11 : i64} {
  func.func @neuro_fuzzy_kernel(%arg0: i32, %arg1: memref<72x128xbf16, #tpu.memory_space<vmem>>, %arg2: memref<160x72xbf16, #tpu.memory_space<vmem>>, %arg3: memref<4x128xbf16, #tpu.memory_space<vmem>>, %arg4: memref<8x128xf32, #tpu.memory_space<vmem>>) attributes {dimension_semantics = [#tpu.dimension_semantics<parallel>], iteration_bounds = array<i64: 1>, scalar_prefetch = 0 : i64, scratch_operands = 0 : i64, tpu.core_type = #tpu.core_type<tc>, window_params = [{transform_indices = @transform_0, window_bounds = array<i64: 72, 128>}, {pipeline_mode = #tpu.pipeline_mode<synchronous>, transform_indices = @transform_1, window_bounds = array<i64: 160, 72>}, {pipeline_mode = #tpu.pipeline_mode<synchronous>, transform_indices = @transform_2, window_bounds = array<i64: 4, 128>}, {transform_indices = @transform_3, window_bounds = array<i64: 8, 128>}]} {
    %c0 = arith.constant 0 : index
    %c0_0 = arith.constant 0 : index
    %0 = vector.load %arg2[%c0, %c0_0] : memref<160x72xbf16, #tpu.memory_space<vmem>>, vector<160x72xbf16>
    %c0_1 = arith.constant 0 : index
    %c0_2 = arith.constant 0 : index
    %1 = vector.load %arg1[%c0_1, %c0_2] : memref<72x128xbf16, #tpu.memory_space<vmem>>, vector<72x128xbf16>
    %cst = arith.constant dense<0.000000e+00> : vector<160x128xf32>
    %2 = tpu.matmul %0, %1, %cst {dimension_numbers = #tpu.dot_dimension_numbers<[1], [0], [0], [1], [0, 0, 1, 1], [], []>} : vector<160x72xbf16>, vector<72x128xbf16>, vector<160x128xf32> -> vector<160x128xf32>
    %3 = vector.extract_strided_slice %2 {offsets = [0, 0], sizes = [128, 128], strides = [1, 1]} : vector<160x128xf32> to vector<128x128xf32>
    %4 = arith.mulf %3, %3 : vector<128x128xf32>
    %5 = arith.truncf %4 : vector<128x128xf32> to vector<128x128xbf16>
    %c0_3 = arith.constant 0 : index
    %c0_4 = arith.constant 0 : index
    %6 = vector.load %arg3[%c0_3, %c0_4] : memref<4x128xbf16, #tpu.memory_space<vmem>>, vector<4x128xbf16>
    %cst_5 = arith.constant dense<0.000000e+00> : vector<4x128xf32>
    %7 = tpu.matmul %6, %5, %cst_5 {dimension_numbers = #tpu.dot_dimension_numbers<[1], [0], [0], [1], [0, 0, 1, 1], [], []>} : vector<4x128xbf16>, vector<128x128xbf16>, vector<4x128xf32> -> vector<4x128xf32>
    %cst_6 = arith.constant 9.99999996E-13 : f32
    %8 = vector.broadcast %cst_6 : f32 to vector<4x128xf32>
    %9 = arith.maximumf %7, %8 : vector<4x128xf32>
    %cst_7 = arith.constant 0.000000e+00 : f32
    %10 = vector.broadcast %cst_7 : f32 to vector<4x128xf32>
    %11 = arith.subf %10, %9 : vector<4x128xf32>
    %cst_8 = arith.constant dense<0xFF800000> : vector<128xf32>
    %12 = vector.multi_reduction <maximumf>, %11, %cst_8 [0] : vector<4x128xf32> to vector<128xf32>
    %13 = vector.shape_cast %12 : vector<128xf32> to vector<1x128xf32>
    %14 = vector.broadcast %13 : vector<1x128xf32> to vector<4x128xf32>
    %15 = arith.subf %11, %14 : vector<4x128xf32>
    %16 = math.exp %15 : vector<4x128xf32>
    %cst_9 = arith.constant dense<0.000000e+00> : vector<128xf32>
    %17 = vector.multi_reduction <add>, %16, %cst_9 [0] : vector<4x128xf32> to vector<128xf32>
    %18 = vector.shape_cast %17 : vector<128xf32> to vector<1x128xf32>
    %19 = tpu.reciprocal %18 {approx = true} : vector<1x128xf32> -> vector<1x128xf32>
    %20 = vector.broadcast %19 : vector<1x128xf32> to vector<4x128xf32>
    %21 = arith.mulf %16, %20 : vector<4x128xf32>
    %22 = vector.extract_strided_slice %2 {offsets = [128, 0], sizes = [32, 128], strides = [1, 1]} : vector<160x128xf32> to vector<32x128xf32>
    %23 = vector.extract_strided_slice %21 {offsets = [0, 0], sizes = [1, 128], strides = [1, 1]} : vector<4x128xf32> to vector<1x128xf32>
    %24 = vector.extract_strided_slice %22 {offsets = [0, 0], sizes = [8, 128], strides = [1, 1]} : vector<32x128xf32> to vector<8x128xf32>
    %25 = vector.broadcast %23 : vector<1x128xf32> to vector<8x128xf32>
    %26 = arith.mulf %25, %24 : vector<8x128xf32>
    %27 = vector.extract_strided_slice %21 {offsets = [1, 0], sizes = [1, 128], strides = [1, 1]} : vector<4x128xf32> to vector<1x128xf32>
    %28 = vector.extract_strided_slice %22 {offsets = [8, 0], sizes = [8, 128], strides = [1, 1]} : vector<32x128xf32> to vector<8x128xf32>
    %29 = vector.broadcast %27 : vector<1x128xf32> to vector<8x128xf32>
    %30 = arith.mulf %29, %28 : vector<8x128xf32>
    %31 = arith.addf %26, %30 : vector<8x128xf32>
    %32 = vector.extract_strided_slice %21 {offsets = [2, 0], sizes = [1, 128], strides = [1, 1]} : vector<4x128xf32> to vector<1x128xf32>
    %33 = vector.extract_strided_slice %22 {offsets = [16, 0], sizes = [8, 128], strides = [1, 1]} : vector<32x128xf32> to vector<8x128xf32>
    %34 = vector.broadcast %32 : vector<1x128xf32> to vector<8x128xf32>
    %35 = arith.mulf %34, %33 : vector<8x128xf32>
    %36 = arith.addf %31, %35 : vector<8x128xf32>
    %37 = vector.extract_strided_slice %21 {offsets = [3, 0], sizes = [1, 128], strides = [1, 1]} : vector<4x128xf32> to vector<1x128xf32>
    %38 = vector.extract_strided_slice %22 {offsets = [24, 0], sizes = [8, 128], strides = [1, 1]} : vector<32x128xf32> to vector<8x128xf32>
    %39 = vector.broadcast %37 : vector<1x128xf32> to vector<8x128xf32>
    %40 = arith.mulf %39, %38 : vector<8x128xf32>
    %41 = arith.addf %36, %40 : vector<8x128xf32>
    %c0_10 = arith.constant 0 : index
    %c0_11 = arith.constant 0 : index
    %42 = vector.load %arg4[%c0_10, %c0_11] : memref<8x128xf32, #tpu.memory_space<vmem>>, vector<8x128xf32>
    tpu.vector_store %arg4[%c0_10, %c0_11], %41 {strides = array<i32>} : memref<8x128xf32, #tpu.memory_space<vmem>>, vector<8x128xf32>,
    return
  }
  func.func @transform_0(%arg0: i32) -> (i32, i32) {
    %c0_i32 = arith.constant 0 : i32
    %c0_i32_0 = arith.constant 0 : i32
    return %c0_i32, %arg0 : i32, i32
  }
  func.func @transform_1(%arg0: i32) -> (i32, i32) {
    %c0_i32 = arith.constant 0 : i32
    %c0_i32_0 = arith.constant 0 : i32
    %c0_i32_1 = arith.constant 0 : i32
    return %c0_i32, %c0_i32_0 : i32, i32
  }
  func.func @transform_2(%arg0: i32) -> (i32, i32) {
    %c0_i32 = arith.constant 0 : i32
    %c0_i32_0 = arith.constant 0 : i32
    %c0_i32_1 = arith.constant 0 : i32
    return %c0_i32, %c0_i32_0 : i32, i32
  }
  func.func @transform_3(%arg0: i32) -> (i32, i32) {
    %c0_i32 = arith.constant 0 : i32
    %c0_i32_0 = arith.constant 0 : i32
    return %c0_i32, %arg0 : i32, i32
  }
}

</mosaic_0001>

<bundles_post_ra>
// kernel: tpu_custom_call.1
= control target key start
LH: loop header
LB: loop body
LE: loop exit
PB: predicated region body
PF: predicated region fallthrough
CT: control target
= control target key end

     0   :  { %vm122_vm0 = vcmask 588800   ;;  %vm153_vm1 = vcmask 1043456   ;;  %s637_s0 = inlined_call_operand.vmem [shape: bf16[72,128], index: 0, kind: input, shape index: {}]   ;;  %s638_s1 = inlined_call_operand.vmem [shape: bf16[160,72], index: 1, kind: input, shape index: {}]   ;;  %s639_s2 = inlined_call_operand.vmem [shape: bf16[4,128], index: 2, kind: input, shape index: {}]   ;;  %s640_s3 = inlined_call_operand.hbm [shape: f32[8,128], index: 3, kind: output, shape index: {}]  }
   0x1   :  { %v497_v0 = vld [vmem:[%s637_s0] sm:$0xff]   ;;  %v498_v1 = vld [vmem:[%s637_s0 + $0x8] sm:$0xff]   ;;  %v499_v2 = vld [vmem:[%s637_s0 + $0x10] sm:$0xff]  }
   0x2   :  { %443 = vmatprep.subr.bf16.mxu0 %v497_v0  ;;  %v502_v3 = vld [vmem:[%s638_s1] sm:$0xff]   ;;  %v500_v4 = vld [vmem:[%s637_s0 + $0x18] sm:$0xff]  }
   0x3   :  { %444 = vmatpush3.bf16.msra.mxu0 %v497_v0  ;;  %453 = vmatprep.mubr.msk.bf16.mxu0 %vm122_vm0, %v502_v3  ;;  %v501_v5 = vld [vmem:[%s637_s0 + $0x20] ss:$0 sps:$4 sm:$0xff]  }
   0x4   :  { %445 = vmatprep.subr.bf16.mxu0 %v498_v1 }
   0x7   :  { %446 = vmatpush3.bf16.msra.mxu0 %v498_v1 }
   0x8   :  { %447 = vmatprep.subr.bf16.mxu0 %v499_v2 }
   0xb   :  { %448 = vmatpush3.bf16.msra.mxu0 %v499_v2 }
   0xc   :  { %449 = vmatprep.subr.bf16.mxu0 %v500_v4 }
   0xd   :  { %8 = vsyncpa [#allocation3], 0  ;;  %v155_v6 = vsel %vm153_vm1, %v501_v5, 0  ;;  %v503_v7 = vld [vmem:[%s638_s1 + $0x8] sm:$0xff]   ;;  %v504_v8 = vld [vmem:[%s638_s1 + $0x10] sm:$0xff]   ;;  %v540_v14 = vmov 0.0  }
   0xe   :  { %v505_v9 = vld [vmem:[%s638_s1 + $0x18] sm:$0xff]   ;;  %v506_v10 = vld [vmem:[%s638_s1 + $0x20] sm:$0xff]   ;;  %v507_v11 = vld [vmem:[%s638_s1 + $0x28] sm:$0xff]   ;;  %473 = vmatprep.subr.bf16.mxu1 %v540_v14  ;;  %vm541_vm2 = vmmov 0  }
   0xf   :  { %450 = vmatpush3.bf16.msra.mxu0 %v500_v4  ;;  %v508_v12 = vld [vmem:[%s638_s1 + $0x30] sm:$0xff]   ;;  %v509_v13 = vld [vmem:[%s638_s1 + $0x38] sm:$0xff]   ;;  %489 = vmatprep.mubr.msk.bf16.mxu1 %vm541_vm2, %v540_v14  ;;  %v510_v15 = vld [vmem:[%s638_s1 + $0x40] sm:$0xff]  }
  0x10   :  { %493 = vmatprep.subr.msk.bf16.mxu0 %vm153_vm1, %v501_v5  ;;  %v511_v16 = vld [vmem:[%s638_s1 + $0x48] sm:$0xff]   ;;  %v294_v57 = vld [vmem:[%s639_s2] sm:$0x3]  ;;  %s542_s2 = smov [#allocation2]  }
  0x11   :  { %s386_s15 = sshll.u32 %s542_s2, 4  ;;  %s387_s15 = int_to_ptr.vmem [resolvable:$true] %s386_s15 }
  0x12   :  { %s516_s16 = scalar_lea.vmem %s387_s15, 128  ;;  %p521_p1 = scmp.lt.s32.totalorder %s387_s15, %s387_s15 }
  0x13   :  { %452 = vmatpush3.bf16.msra.mxu0 %v155_v6  ;;  %p517_p0 = scmp.ne.s32.totalorder %s387_s15, %s516_s16  ;;  %p522_p2 = scmp.lt.s32.totalorder %s516_s16, %s516_s16 }
  0x15   :  { %p523_p3 = por %p522_p2, %p521_p1 }
  0x16   :  { %454 = vmatmul.mubr.msk.bf16.vlgmr.msra.gmra.mrb[0].mxu0 %vm122_vm0, %v503_v7 }
  0x17   :  { %457 = vmatprep.mubr.msk.bf16.mxu0 %vm122_vm0, %v504_v8  ;;  %p524_p4 = pnand %p523_p3, %p517_p0 }
  0x1e   :  { %458 = vmatmul.mubr.msk.bf16.gmra.mrb[4].mxu0 %vm122_vm0, %v505_v9 }
  0x1f   :  { %461 = vmatprep.mubr.msk.bf16.mxu0 %vm122_vm0, %v506_v10 }
  0x26   :  { %462 = vmatmul.mubr.msk.bf16.gmra.mrb[8].mxu0 %vm122_vm0, %v507_v11 }
  0x27   :  { %465 = vmatprep.mubr.msk.bf16.mxu0 %vm122_vm0, %v508_v12 }
  0x2e   :  { %466 = vmatmul.mubr.msk.bf16.gmra.mrb[12].mxu0 %vm122_vm0, %v509_v13 }
  0x2f   :  { %469 = vmatprep.mubr.msk.bf16.mxu0 %vm122_vm0, %v510_v15 }
  0x36   :  { %470 = vmatmul.mubr.msk.bf16.gmra.mrb[16].mxu0 %vm122_vm0, %v511_v16 }
  0xe9   :  { %v455_v17 = vpop.f32.mrb[0].mxu0 }
  0xea   :  { %v191_v18 = vpop.f32.mrb[1].mxu0  ;;  %v272_v20 = vmul.f32 %v455_v17, %v455_v17 }
  0xeb   :  { %v456_v19 = vpop.f32.mrb[2].mxu0  ;;  %v270_v23 = vmul.f32 %v191_v18, %v191_v18 }
  0xec   :  { %v273_v21 = vmul.f32 %v456_v19, %v456_v19  ;;  %v194_v22 = vpop.f32.mrb[3].mxu0 }
  0xed   :  { %v271_v24 = vmul.f32 %v194_v22, %v194_v22 }
  0xee   :  { %v287_v25 = vpack.c.bf16 %v273_v21, %v272_v20  ;;  %v356_v21 = vlaneseq }
  0xef   :  { %v286_v26 = vpack.c.bf16 %v271_v24, %v270_v23 }
  0xf0   :  { %v357_v22 = vshrl.u32 %v356_v21, 7 }
  0xf1   :  { %v459_v27 = vpop.f32.mrb[4].mxu0  ;;  %474 = vmatpush3.bf16.msra.mxu1 %v286_v26 }
  0xf2   :  { %v207_v28 = vpop.f32.mrb[5].mxu0  ;;  %475 = vmatprep.subr.bf16.mxu1 %v540_v14  ;;  %v276_v30 = vmul.f32 %v459_v27, %v459_v27  ;;  %v369_v23 = vsub.s32 2, %v357_v22  ;;  %v358_v24 = vsub.s32 0, %v357_v22  ;;  %v363_v26 = vsub.s32 1, %v357_v22 }
  0xf3   :  { %v460_v29 = vpop.f32.mrb[6].mxu0  ;;  %v274_v33 = vmul.f32 %v207_v28, %v207_v28 }
  0xf4   :  { %v277_v31 = vmul.f32 %v460_v29, %v460_v29  ;;  %v210_v32 = vpop.f32.mrb[7].mxu0 }
  0xf5   :  { %v275_v34 = vmul.f32 %v210_v32, %v210_v32  ;;  %476 = vmatpush3.bf16.msra.mxu1 %v287_v25  ;;  %v375_v25 = vsub.s32 3, %v357_v22 }
  0xf6   :  { %v289_v35 = vpack.c.bf16 %v277_v31, %v276_v30  ;;  %477 = vmatprep.subr.bf16.mxu1 %v540_v14 }
  0xf7   :  { %v288_v36 = vpack.c.bf16 %v275_v34, %v274_v33 }
  0xf9   :  { %v463_v37 = vpop.f32.mrb[8].mxu0  ;;  %478 = vmatpush3.bf16.msra.mxu1 %v288_v36 }
  0xfa   :  { %v223_v38 = vpop.f32.mrb[9].mxu0  ;;  %479 = vmatprep.subr.bf16.mxu1 %v540_v14  ;;  %v280_v40 = vmul.f32 %v463_v37, %v463_v37 }
  0xfb   :  { %v464_v39 = vpop.f32.mrb[10].mxu0  ;;  %v278_v43 = vmul.f32 %v223_v38, %v223_v38 }
  0xfc   :  { %v281_v41 = vmul.f32 %v464_v39, %v464_v39  ;;  %v226_v42 = vpop.f32.mrb[11].mxu0 }
  0xfd   :  { %v279_v44 = vmul.f32 %v226_v42, %v226_v42  ;;  %480 = vmatpush3.bf16.msra.mxu1 %v289_v35 }
  0xfe   :  { %v291_v45 = vpack.c.bf16 %v281_v41, %v280_v40  ;;  %481 = vmatprep.subr.bf16.mxu1 %v540_v14 }
  0xff   :  { %v290_v46 = vpack.c.bf16 %v279_v44, %v278_v43 }
 0x101   :  { %v467_v47 = vpop.f32.mrb[12].mxu0  ;;  %482 = vmatpush3.bf16.msra.mxu1 %v290_v46 }
 0x102   :  { %v239_v48 = vpop.f32.mrb[13].mxu0  ;;  %483 = vmatprep.subr.bf16.mxu1 %v540_v14  ;;  %v284_v50 = vmul.f32 %v467_v47, %v467_v47 }
 0x103   :  { %v468_v49 = vpop.f32.mrb[14].mxu0  ;;  %v282_v53 = vmul.f32 %v239_v48, %v239_v48 }
 0x104   :  { %v285_v51 = vmul.f32 %v468_v49, %v468_v49  ;;  %v242_v52 = vpop.f32.mrb[15].mxu0 }
 0x105   :  { %v283_v54 = vmul.f32 %v242_v52, %v242_v52  ;;  %484 = vmatpush3.bf16.msra.mxu1 %v291_v45 }
 0x106   :  { %v293_v55 = vpack.c.bf16 %v285_v51, %v284_v50  ;;  %485 = vmatprep.subr.bf16.mxu1 %v540_v14 }
 0x107   :  { %v292_v56 = vpack.c.bf16 %v283_v54, %v282_v53 }
 0x109   :  { %486 = vmatpush3.bf16.msra.mxu1 %v292_v56  ;;  %v471_v58 = vpop.f32.mrb[16].mxu0 }
 0x10a   :  { %487 = vmatprep.subr.bf16.mxu1 %v540_v14  ;;  %v255_v59 = vpop.f32.mrb[17].mxu0 }
 0x10b   :  { %v472_v60 = vpop.f32.mrb[18].mxu0 }
 0x10c   :  { %v258_v61 = vpop.f32.mrb[19].mxu0 }
 0x10d   :  { %488 = vmatpush3.bf16.msra.mxu1 %v293_v55 }
 0x110   :  { %490 = vmatmul.mubr.bf16.vlgmr.msra.gmra.mrb[0].mxu1 %v294_v57 }
 0x1e3   :  { %v329_v62 = vpop.f32.mrb[0].mxu1 }
 0x1e4   :  { %v335_v63 = vmax.f32 %v329_v62, 1e-12  ;;  %v491_v0 = vpop.f32.mrb[1].mxu1 }
 0x1e5   :  { %v332_v1 = vpop.f32.mrb[2].mxu1 }
 0x1e6   :  { %v336_v2 = vsub.f32 0.0, %v335_v63  ;;  %v492_v3 = vpop.f32.mrb[3].mxu1 }
 0x1e8   :  { %v337_v4 = vsel %vm153_vm1, %v336_v2, -inf }
 0x1e9   :  { %v338_v5 = vrot.slane %v337_v4, 4 }
 0x1eb   :  { %v339_v6 = vmax.f32 %v337_v4, %v338_v5 }
 0x1ed   :  { %v340_v7 = vrot.slane %v339_v6, 2 }
 0x1ef   :  { %v341_v8 = vmax.f32 %v339_v6, %v340_v7 }
 0x1f1   :  { %v342_v9 = vrot.slane %v341_v8, 1 }
 0x1f3   :  { %v343_v10 = vmax.f32 %v341_v8, %v342_v9 }
 0x1f5   :  { %v344_v11 = vsub.f32 %v336_v2, %v343_v10 }
 0x1f7   :  { %v345_v12 = vmul.f32 1.442695, %v344_v11 }
 0x1f9   :  { %512 = vpow2.f32 %v345_v12 }
 0x203   :  { %v513_v13 = vpop.eup %512 }
 0x204   :  { %v347_v14 = vsel %vm153_vm1, %v513_v13, 0.0 }
 0x205   :  { %v348_v15 = vrot.slane %v347_v14, 4 }
 0x207   :  { %v349_v16 = vadd.f32 %v348_v15, %v347_v14 }
 0x209   :  { %v350_v17 = vrot.slane %v349_v16, 2 }
 0x20b   :  { %v351_v18 = vadd.f32 %v350_v17, %v349_v16 }
 0x20d   :  { %v352_v19 = vrot.slane %v351_v18, 1 }
 0x20f   :  { %v353_v20 = vadd.f32 %v352_v19, %v351_v18 }
 0x211   :  { %514 = vrcp.f32 %v353_v20 }
 0x21b   :  { %v515_v27 = vpop.eup %514 }
 0x21c   :  { %v355_v28 = vmul.f32 %v515_v27, %v513_v13 }
 0x21e   :  { %v370_v29 = vrot.slane %v355_v28, %v369_v23  ;;  %v359_v30 = vrot.slane %v355_v28, %v358_v24  ;;  %v376_v31 = vrot.slane %v355_v28, %v375_v25  ;;  %v364_v32 = vrot.slane %v355_v28, %v363_v26 }
 0x220   :  { %v371_v33 = vmul.f32 %v471_v58, %v370_v29  ;;  %v360_v34 = vmul.f32 %v359_v30, %v255_v59  ;;  %v377_v35 = vmul.f32 %v472_v60, %v376_v31  ;;  %v365_v36 = vmul.f32 %v364_v32, %v258_v61 }
 0x222   :  { %v366_v37 = vadd.f32 %v365_v36, %v360_v34 }
 0x224   :  { %v372_v38 = vadd.f32 %v371_v33, %v366_v37 }
 0x226   :  { %v378_v39 = vadd.f32 %v377_v35, %v372_v38 }
 0x228   :  { %379 = vst [vmem:[#allocation2] sm:$0xff] %v378_v39 }
 0x229   :  { %527 = shalt.err (!%p524_p4)
}
 0x22a   :  { %s528_s19 = scalar_lea.hbm %s640_s3, 128 }
 0x22b   :  { %p529_p5 = scmp.ne.s32.totalorder %s640_s3, %s528_s19  ;;  %p532_p6 = scmp.lt.u32.totalorder %s528_s19, %s640_s3 }
 0x22d   :  { %p534_p7 = pnand %p532_p6, %p529_p5 }
 0x22f   :  { %537 = shalt.err (!%p534_p7)
}
 0x230   :  { %389 = dma.vmem_to_hbm [thread:$0]  %s387_s15, 128, %s640_s3, [#allocation3]  }
 0x231   :  { %538 = dma.done.wait [#allocation3], 128  }
 0x232   :  { %539 = vsyncadd [#allocation3], 4294967168 }
 0x233   :  { %393 = vsyncpa [#allocation3], 1 }

</bundles_post_ra>
